<compile_context>
chip_gen: v7x
topology: tpu7x:2x2x1
jax: 0.10.0
libtpu: 0.0.40
codegen_flags: <defaults>
</compile_context>

<pallas_src>
import jax
import jax.numpy as jnp
import numpy as np
from jax.experimental import pallas as pl
from jax.experimental.pallas import tpu as pltpu


def _cdiv(a, b):
    return -(-a // b)


def _choose_row_tile(m, w, s2, itemsize, n_batch,
                     budget_bytes=4 * 1024 * 1024, min_blocks=4):
    """Tile over the merged C_out*H row axis.

    Per-step working set ~= double-buffered input+output blocks plus the f32
    accumulator: tm * s2 * w * (2*2*itemsize + 4) bytes.  Keep it near
    `budget_bytes`, and keep >= `min_blocks` grid blocks so both v7x
    TensorCores and the DMA pipeline stay fed.
    """
    per_row = s2 * w * (2 * 2 * itemsize + 4)
    tm = max(1, budget_bytes // per_row)
    if tm >= m:
        tm = m                        # full extent: always a legal block dim
    else:
        tm = max(8, (tm // 8) * 8)    # sublane-aligned tile; edge block is masked by Pallas
        tm = min(tm, m)
    while tm > 8 and (tm // 2) % 8 == 0 and n_batch * _cdiv(m, tm) < min_blocks:
        tm //= 2
    return tm


def _full_perm_matrices(s, w, dtype):
    """P[k, ww, i*s*w + ww*s + j] = 1 where k = i*s + j (exact 0/1 values)."""
    s2 = s * s
    p = np.zeros((s2, w, s2 * w), dtype=np.float32)
    ww = np.arange(w)
    for k in range(s2):
        i, j = divmod(k, s)
        p[k, ww, i * s * w + ww * s + j] = 1.0
    return jnp.asarray(p, dtype=dtype)


def _segment_perm_matrices(s, w, dtype):
    """P[j, ww, ww*s + j] = 1 — per-output-segment interleave over sub-pixel column j."""
    p = np.zeros((s, w, s * w), dtype=np.float32)
    ww = np.arange(w)
    for j in range(s):
        p[j, ww, ww * s + j] = 1.0
    return jnp.asarray(p, dtype=dtype)


def _make_kernel(s, w, op_dtype, precision, segmented):
    s2 = s * s
    sw = s * w

    def mm(a, b):
        return jnp.dot(a.astype(op_dtype), b,
                       preferred_element_type=jnp.float32, precision=precision)

    if segmented:
        def kernel(x_ref, p_ref, o_ref):
            # x_ref: (1, s2, tm, W)   p_ref: (s, W, s*W)   o_ref: (1, tm, s2*W)
            for i in range(s):
                acc = mm(x_ref[0, i * s], p_ref[0])           # init with first dot
                for j in range(1, s):
                    acc = acc + mm(x_ref[0, i * s + j], p_ref[j])
                o_ref[0, :, i * sw:(i + 1) * sw] = acc.astype(o_ref.dtype)
    else:
        def kernel(x_ref, p_ref, o_ref):
            # x_ref: (1, s2, tm, W)   p_ref: (s2, W, s2*W)   o_ref: (1, tm, s2*W)
            acc = mm(x_ref[0, 0], p_ref[0])                    # init with first dot
            for k in range(1, s2):
                acc = acc + mm(x_ref[0, k], p_ref[k])
            o_ref[0] = acc.astype(o_ref.dtype)

    return kernel


def expand_pallas(x, gain=2):
    """Depth-to-space: (N, C, H, W) -> (N, C // gain**2, H * gain, W * gain)."""
    s = int(gain)
    s2 = s * s
    n, c, h, w = x.shape
    if c % s2 != 0:
        raise ValueError(f"channels ({c}) must be divisible by gain**2 ({s2})")
    c_out = c // s2
    m = c_out * h          # merged row axis: one row per (output channel, input row)
    sw_full = s2 * w       # lane width of one output row in the merged view

    # Free contiguous view: x5[n, i*s+j, co*h + hh, ww] == x[n, (i*s+j)*c_out + co, hh, ww]
    x5 = x.reshape(n, s2, m, w)

    # MXU operand dtype: native bf16 (0/1 weights exact), otherwise exact f32.
    if x.dtype == jnp.bfloat16:
        op_dtype, precision = jnp.bfloat16, None
    else:
        op_dtype, precision = jnp.float32, jax.lax.Precision.HIGHEST

    segmented = (s * w) % 128 == 0   # keep per-segment stores unmasked & lane-aligned
    perm = (_segment_perm_matrices if segmented else _full_perm_matrices)(s, w, op_dtype)

    tm = _choose_row_tile(m, w, s2, x.dtype.itemsize, n)
    grid = (n, _cdiv(m, tm))

    kernel = _make_kernel(s, w, op_dtype, precision, segmented)

    out_m = pl.pallas_call(
        kernel,
        out_shape=jax.ShapeDtypeStruct((n, m, sw_full), x.dtype),
        grid=grid,
        in_specs=[
            pl.BlockSpec((1, s2, tm, w), lambda b, r: (b, 0, r, 0)),
            # Constant block index -> fetched once, stays resident in VMEM.
            pl.BlockSpec(perm.shape, lambda b, r: (0, 0, 0)),
        ],
        out_specs=pl.BlockSpec((1, tm, sw_full), lambda b, r: (b, r, 0)),
        compiler_params=pltpu.CompilerParams(
            dimension_semantics=("parallel", "parallel"),
            vmem_limit_bytes=32 * 1024 * 1024),
    )(x5, perm)

    # Free contiguous view back to the true NCHW output layout.
    return out_m.reshape(n, c_out, h * s, w * s)


def expand_reference(x, gain=2):
    """Pure-JAX reference matching the PyTorch module."""
    b, c, h, w = x.shape
    s = gain
    y = x.reshape(b, s, s, c // (s * s), h, w)
    y = jnp.transpose(y, (0, 3, 4, 1, 5, 2))
    return y.reshape(b, c // (s * s), h * s, w * s)


if __name__ == "__main__":
    key = jax.random.PRNGKey(0)
    k1, k2, k3, k4 = jax.random.split(key, 4)

    # 1) Main case: float32, gain=2 (channels divisible by gain**2).
    x = jax.random.normal(k1, (2, 8, 16, 16), dtype=jnp.float32)
    out = jax.block_until_ready(expand_pallas(x, gain=2))
    ref = expand_reference(x, gain=2)
    assert out.shape == (2, 2, 32, 32)
    np.testing.assert_allclose(np.asarray(out), np.asarray(ref), rtol=1e-6, atol=1e-6)

    # 2) bf16 fast path (native-dtype MXU operands) — must be bit-exact.
    xb = jax.random.normal(k2, (2, 8, 16, 16), dtype=jnp.bfloat16)
    outb = jax.block_until_ready(expand_pallas(xb, gain=2))
    refb = expand_reference(xb, gain=2)
    np.testing.assert_array_equal(np.asarray(outb.astype(jnp.float32)),
                                  np.asarray(refb.astype(jnp.float32)))

    # 3) Segment-split path (gain*W is a multiple of 128).
    xs = jax.random.normal(k3, (1, 4, 8, 64), dtype=jnp.float32)
    outs = jax.block_until_ready(expand_pallas(xs, gain=2))
    np.testing.assert_allclose(np.asarray(outs),
                               np.asarray(expand_reference(xs, gain=2)),
                               rtol=1e-6, atol=1e-6)

    # 4) Non-default gain.
    x3 = jax.random.normal(k4, (1, 9, 8, 16), dtype=jnp.float32)
    out3 = jax.block_until_ready(expand_pallas(x3, gain=3))
    np.testing.assert_allclose(np.asarray(out3),
                               np.asarray(expand_reference(x3, gain=3)),
                               rtol=1e-6, atol=1e-6)

    print("KERNEL_OK")
</pallas_src>

<mosaic_0001>
module attributes {stable_mosaic.version = 11 : i64} {
  func.func @kernel(%arg0: i32, %arg1: i32, %arg2: memref<1x4x16x16xf32, #tpu.memory_space<vmem>>, %arg3: memref<4x16x64xf32, #tpu.memory_space<vmem>>, %arg4: memref<1x16x64xf32, #tpu.memory_space<vmem>>) attributes {dimension_semantics = [#tpu.dimension_semantics<parallel>, #tpu.dimension_semantics<parallel>], iteration_bounds = array<i64: 2, 2>, scalar_prefetch = 0 : i64, scratch_operands = 0 : i64, tpu.core_type = #tpu.core_type<tc>, window_params = [{transform_indices = @transform_0, window_bounds = array<i64: 1, 4, 16, 16>}, {pipeline_mode = #tpu.pipeline_mode<synchronous>, transform_indices = @transform_1, window_bounds = array<i64: 4, 16, 64>}, {transform_indices = @transform_2, window_bounds = array<i64: 1, 16, 64>}]} {
    %c0 = arith.constant 0 : index
    %c0_0 = arith.constant 0 : index
    %c0_1 = arith.constant 0 : index
    %c0_2 = arith.constant 0 : index
    %0 = vector.load %arg2[%c0, %c0_0, %c0_1, %c0_2] : memref<1x4x16x16xf32, #tpu.memory_space<vmem>>, vector<1x1x16x16xf32>
    %1 = vector.shape_cast %0 : vector<1x1x16x16xf32> to vector<16x16xf32>
    %c0_3 = arith.constant 0 : index
    %c0_4 = arith.constant 0 : index
    %c0_5 = arith.constant 0 : index
    %2 = vector.load %arg3[%c0_3, %c0_4, %c0_5] : memref<4x16x64xf32, #tpu.memory_space<vmem>>, vector<1x16x64xf32>
    %3 = vector.shape_cast %2 : vector<1x16x64xf32> to vector<16x64xf32>
    %cst = arith.constant dense<0.000000e+00> : vector<16x64xf32>
    %4 = tpu.matmul %1, %3, %cst {dimension_numbers = #tpu.dot_dimension_numbers<[1], [0], [0], [1], [0, 0, 1, 1], [], []>, precision = #tpu.contract_precision<fp32>} : vector<16x16xf32>, vector<16x64xf32>, vector<16x64xf32> -> vector<16x64xf32>
    %c0_6 = arith.constant 0 : index
    %c1 = arith.constant 1 : index
    %c0_7 = arith.constant 0 : index
    %c0_8 = arith.constant 0 : index
    %5 = vector.load %arg2[%c0_6, %c1, %c0_7, %c0_8] : memref<1x4x16x16xf32, #tpu.memory_space<vmem>>, vector<1x1x16x16xf32>
    %6 = vector.shape_cast %5 : vector<1x1x16x16xf32> to vector<16x16xf32>
    %c1_9 = arith.constant 1 : index
    %c0_10 = arith.constant 0 : index
    %c0_11 = arith.constant 0 : index
    %7 = vector.load %arg3[%c1_9, %c0_10, %c0_11] : memref<4x16x64xf32, #tpu.memory_space<vmem>>, vector<1x16x64xf32>
    %8 = vector.shape_cast %7 : vector<1x16x64xf32> to vector<16x64xf32>
    %cst_12 = arith.constant dense<0.000000e+00> : vector<16x64xf32>
    %9 = tpu.matmul %6, %8, %cst_12 {dimension_numbers = #tpu.dot_dimension_numbers<[1], [0], [0], [1], [0, 0, 1, 1], [], []>, precision = #tpu.contract_precision<fp32>} : vector<16x16xf32>, vector<16x64xf32>, vector<16x64xf32> -> vector<16x64xf32>
    %10 = arith.addf %4, %9 : vector<16x64xf32>
    %c0_13 = arith.constant 0 : index
    %c2 = arith.constant 2 : index
    %c0_14 = arith.constant 0 : index
    %c0_15 = arith.constant 0 : index
    %11 = vector.load %arg2[%c0_13, %c2, %c0_14, %c0_15] : memref<1x4x16x16xf32, #tpu.memory_space<vmem>>, vector<1x1x16x16xf32>
    %12 = vector.shape_cast %11 : vector<1x1x16x16xf32> to vector<16x16xf32>
    %c2_16 = arith.constant 2 : index
    %c0_17 = arith.constant 0 : index
    %c0_18 = arith.constant 0 : index
    %13 = vector.load %arg3[%c2_16, %c0_17, %c0_18] : memref<4x16x64xf32, #tpu.memory_space<vmem>>, vector<1x16x64xf32>
    %14 = vector.shape_cast %13 : vector<1x16x64xf32> to vector<16x64xf32>
    %cst_19 = arith.constant dense<0.000000e+00> : vector<16x64xf32>
    %15 = tpu.matmul %12, %14, %cst_19 {dimension_numbers = #tpu.dot_dimension_numbers<[1], [0], [0], [1], [0, 0, 1, 1], [], []>, precision = #tpu.contract_precision<fp32>} : vector<16x16xf32>, vector<16x64xf32>, vector<16x64xf32> -> vector<16x64xf32>
    %16 = arith.addf %10, %15 : vector<16x64xf32>
    %c0_20 = arith.constant 0 : index
    %c3 = arith.constant 3 : index
    %c0_21 = arith.constant 0 : index
    %c0_22 = arith.constant 0 : index
    %17 = vector.load %arg2[%c0_20, %c3, %c0_21, %c0_22] : memref<1x4x16x16xf32, #tpu.memory_space<vmem>>, vector<1x1x16x16xf32>
    %18 = vector.shape_cast %17 : vector<1x1x16x16xf32> to vector<16x16xf32>
    %c3_23 = arith.constant 3 : index
    %c0_24 = arith.constant 0 : index
    %c0_25 = arith.constant 0 : index
    %19 = vector.load %arg3[%c3_23, %c0_24, %c0_25] : memref<4x16x64xf32, #tpu.memory_space<vmem>>, vector<1x16x64xf32>
    %20 = vector.shape_cast %19 : vector<1x16x64xf32> to vector<16x64xf32>
    %cst_26 = arith.constant dense<0.000000e+00> : vector<16x64xf32>
    %21 = tpu.matmul %18, %20, %cst_26 {dimension_numbers = #tpu.dot_dimension_numbers<[1], [0], [0], [1], [0, 0, 1, 1], [], []>, precision = #tpu.contract_precision<fp32>} : vector<16x16xf32>, vector<16x64xf32>, vector<16x64xf32> -> vector<16x64xf32>
    %22 = arith.addf %16, %21 : vector<16x64xf32>
    %c0_27 = arith.constant 0 : index
    %c0_28 = arith.constant 0 : index
    %c0_29 = arith.constant 0 : index
    %23 = vector.load %arg4[%c0_27, %c0_28, %c0_29] : memref<1x16x64xf32, #tpu.memory_space<vmem>>, vector<1x16x64xf32>
    %24 = vector.shape_cast %23 : vector<1x16x64xf32> to vector<16x64xf32>
    %25 = vector.shape_cast %22 : vector<16x64xf32> to vector<1x16x64xf32>
    tpu.vector_store %arg4[%c0_27, %c0_28, %c0_29], %25 {strides = array<i32>} : memref<1x16x64xf32, #tpu.memory_space<vmem>>, vector<1x16x64xf32>,
    return
  }
  func.func @transform_0(%arg0: i32, %arg1: i32) -> (i32, i32, i32, i32) {
    %c0_i32 = arith.constant 0 : i32
    %c0_i32_0 = arith.constant 0 : i32
    %c0_i32_1 = arith.constant 0 : i32
    return %arg0, %c0_i32, %arg1, %c0_i32_0 : i32, i32, i32, i32
  }
  func.func @transform_1(%arg0: i32, %arg1: i32) -> (i32, i32, i32) {
    %c0_i32 = arith.constant 0 : i32
    %c0_i32_0 = arith.constant 0 : i32
    %c0_i32_1 = arith.constant 0 : i32
    %c0_i32_2 = arith.constant 0 : i32
    return %c0_i32, %c0_i32_0, %c0_i32_1 : i32, i32, i32
  }
  func.func @transform_2(%arg0: i32, %arg1: i32) -> (i32, i32, i32) {
    %c0_i32 = arith.constant 0 : i32
    %c0_i32_0 = arith.constant 0 : i32
    return %arg0, %arg1, %c0_i32 : i32, i32, i32
  }
}

</mosaic_0001>

<bundles_post_ra>
// kernel: tpu_custom_call.1
= control target key start
LH: loop header
LB: loop body
LE: loop exit
PB: predicated region body
PF: predicated region fallthrough
CT: control target
= control target key end

     0   :  { %7 = vsyncpa [#allocation4], 0  ;;  %s3368_s0 = inlined_call_operand.vmem [shape: f32[2,4,32,16], index: 0, kind: input, shape index: {}]   ;;  %s3369_s1 = inlined_call_operand.vmem [shape: f32[4,16,64], index: 1, kind: input, shape index: {}]   ;;  %s3370_s2 = inlined_call_operand.hbm [shape: f32[2,32,64], index: 2, kind: output, shape index: {}]  }
   0x1   :  { %9 = vsyncpa [#allocation4 + $0x1], 0  ;;  %s3010_s9 = smov 0   ;;  %s3012_s10 = smov 0  }
   0x2   :  { %s3014_s11 = smov 0   ;;  %s3016_s12 = smov 0  }
   0x3   :  { %s3018_s13 = smov 0   ;;  %s3020_s14 = smov 0  }
   0x4   :  { %s3022_s15 = smov 0   ;;  %s3024_s16 = smov 0  }
   0x5 LB: > { %s2388_s17 = sadd.s32 4294967295, %s2990_s16   ;;  %s2389_s18 = sadd.s32 4294967294, %s2990_s16   ;;  %s2990_s16 = sphi %s3024_s16, %s15_s16   ;;  %s2986_s15 = sphi %s3022_s15, %s3380_s15   ;;  %s2982_s14 = sphi %s3020_s14, %s3379_s14   ;;  %s2978_s13 = sphi %s3018_s13, %s3378_s13   ;;  %s2974_s12 = sphi %s3016_s12, %s3377_s12   ;;  %s2970_s11 = sphi %s3014_s11, %s3376_s11   ;;  %s2966_s10 = sphi %s3012_s10, %s3375_s10   ;;  %s2962_s9 = sphi %s3010_s9, %s3374_s9  }
   0x6   : > { %s24_s19 = sadd.s32 1, %s2982_s14  ;;  %s27_s20 = sadd.s32 1, %s2986_s15 }
   0x7   : > { %p25_p0 = scmp.ge.s32.totalorder %s24_s19, 2  ;;  %p43_p1 = scmp.ne.s32.totalorder %s2970_s11, %s2966_s10 }
   0x8   : > { %p44_p2 = scmp.eq.s32.totalorder %s2990_s16, 0  ;;  %p96_p5 = scmp.eq.s32.totalorder %s2388_s17, 3 }
   0x9   : > { %s3382_s19 = smov (%p25_p0, %s24_s19), 0  ;;  %s3384_s20 = smov (!%p25_p0, %s27_s20), %s2986_s15 }
   0xa   : > { %s32_s21 = ssub.s32 %s2982_s14, %s3382_s19  ;;  %p3062_p3 = por %p44_p2, %p43_p1 }
   0xb   : > { %p29_p4 = scmp.ge.s32.totalorder %s3384_s20, 2  ;;  %p101_p6 = scmp.ne.s32.totalorder %s2966_s10, %s2962_s9 }
   0xc   : > { %p102_p7 = scmp.eq.s32.totalorder %s2389_s18, 3  ;;  %p3070_p8 = por %p96_p5, %p43_p1 }
   0xd   : > { %s3386_s20 = smov (%p29_p4, %s3384_s20), 0  ;;  %s36_s27 = sadd.s32 1, %s2970_s11 }
   0xe   : > { %p3074_p9 = por %p102_p7, %p101_p6  ;;  %s31_s25 = ssub.s32 %s2986_s15, %s3386_s20 }
   0xf   : > { %s33_s26 = sor.u32 %s32_s21, %s31_s25  ;;  %p2391_p11 = scmp.ge.s32.totalorder %s2990_s16, 4 }
  0x10   : > { %p34_p10 = scmp.eq.s32.totalorder %s33_s26, 0 }
  0x11   : > { %121 = sbr.rel (%p2391_p11) target bundleno = 35 (0x23), region = 20 }
  0x12   : > { %s3082_s28 = scalar_select %p34_p10, %s2970_s11, %s36_s27  }
  0x18   : > { %124 = sbr.rel (!%p3062_p3) target bundleno = 35 (0x23), region = 24  ;;  %s126_s29 = sand.u32 (%p3062_p3), 1, %s2970_s11  }
  0x19   : > { %s2393_s30 = sshll.u32 (%p3062_p3), %s2982_s14, 1  ;;  %s2392_s3 = sshll.u32 (%p3062_p3), %s126_s29, 6 }
  0x1a   : > { %s2394_s4 = sshll.u32 (%p3062_p3), %s2986_s15, 4  ;;  %s128_s18 = scalar_lea.vmem (%p3062_p3), [#allocation2], %s2392_s3 }
  0x1b   : > { %s131_s5 = sadd.s32 (%p3062_p3), %s2394_s4, %s2393_s30 }
  0x1c   : > { %s2395_s6 = sshll.u32 (%p3062_p3), %s131_s5, 3 }
  0x1d   : > { %s133_s17 = scalar_lea.vmem (%p3062_p3), %s3368_s0, %s2395_s6 }
  0x1e   : > { %v175_v0 = vld [vmem:[%s133_s17] sm:$0xff] (%p3062_p3)  ;;  %v177_v1 = vld [vmem:[%s133_s17 + $0x8] sm:$0xff] (%p3062_p3) }
  0x1f   : > { %v179_v2 = vld [vmem:[%s133_s17 + $0x20] sm:$0xff]  ;;  %176 = vst [vmem:[%s128_s18] sm:$0xff] %v175_v0  ;;  %178 = vst [vmem:[%s128_s18 + $0x8] sm:$0xff] %v177_v1  ;;  %v181_v3 = vld [vmem:[%s133_s17 + $0x28] sm:$0xff] }
  0x20   : > { %180 = vst [vmem:[%s128_s18 + $0x10] sm:$0xff] %v179_v2  ;;  %v183_v4 = vld [vmem:[%s133_s17 + $0x40] sm:$0xff]  ;;  %v185_v5 = vld [vmem:[%s133_s17 + $0x48] sm:$0xff]  ;;  %182 = vst [vmem:[%s128_s18 + $0x18] sm:$0xff] %v181_v3 }
  0x21   : > { %184 = vst [vmem:[%s128_s18 + $0x20] sm:$0xff] %v183_v4  ;;  %186 = vst [vmem:[%s128_s18 + $0x28] sm:$0xff] %v185_v5  ;;  %v187_v6 = vld [vmem:[%s133_s17 + $0x60] sm:$0xff]  ;;  %v189_v7 = vld [vmem:[%s133_s17 + $0x68] sm:$0xff] }
  0x22   : > { %188 = vst [vmem:[%s128_s18 + $0x30] sm:$0xff] %v187_v6  ;;  %190 = vst [vmem:[%s128_s18 + $0x38] sm:$0xff] %v189_v7 }
  0x23 PF: > { %p2396_p12 = scmp.ge.s32.totalorder %s2990_s16, 1  ;;  %p195_p13 = scmp.lt.s32.totalorder %s2990_s16, 5 }
  0x25   : > { %p196_p0 = pnand %p2396_p12, %p195_p13 }
  0x26   : > { %v2401_v8 = vld [vmem:[%s3369_s1 + $0x10] sm:$0xff] (!%p196_p0)  ;;  %v2402_v9 = vld [vmem:[%s3369_s1 + $0x18] sm:$0xff] (!%p196_p0)  ;;  %v2405_v10 = vld [vmem:[%s3369_s1 + $0x20] sm:$0xff] (!%p196_p0)  ;;  %s3105_s30 = sand.u32 (!%p196_p0), 1, %s2966_s10   ;;  %vm235_vm0 = vcmask (!%p196_p0), 130048   ;;  %s2412_s29 = sshll.u32 (!%p196_p0), %s2974_s12, 1 }
  0x27   : > { %199 = sbr.rel (%p196_p0) target bundleno = 374 (0x176), region = 62  ;;  %v243_v11 = vand.u32 (!%p196_p0), 4294901760, %v2401_v8  ;;  %v246_v12 = vand.u32 (!%p196_p0), 4294901760, %v2402_v9  ;;  %v2406_v13 = vld [vmem:[%s3369_s1 + $0x28] sm:$0xff] (!%p196_p0)  ;;  %v1265_v14 = vand.u32 (!%p196_p0), 4294901760, %v2405_v10  ;;  %s2397_s5 = sshll.u32 (!%p196_p0), %s3105_s30, 6 }
  0x28   : > { %v1268_v15 = vand.u32 (!%p196_p0), 4294901760, %v2406_v13  ;;  %s3113_s6 = scalar_lea.vmem (!%p196_p0), [#allocation2], %s2397_s5  ;;  %v227_v4 = vld [vmem:[%s3369_s1] sm:$0xff] (!%p196_p0)  ;;  %v228_v5 = vld [vmem:[%s3369_s1 + $0x8] sm:$0xff] (!%p196_p0)  ;;  %v2409_v6 = vld [vmem:[%s3369_s1 + $0x30] sm:$0xff] (!%p196_p0)  ;;  %s2398_s27 = sshll.u32 (!%p196_p0), %s3105_s30, 4 }
  0x29   : > { %v3111_v16 = vpack.c.bf16 (!%p196_p0), %v246_v12, %v243_v11  ;;  %v2399_v17 = vld [vmem:[%s3113_s6 + $0x10] sm:$0xff] (!%p196_p0)  ;;  %v3116_v18 = vsub.f32 (!%p196_p0), %v2401_v8, %v243_v11  ;;  %v3118_v19 = vsub.f32 (!%p196_p0), %v2402_v9, %v246_v12  ;;  %v2403_v20 = vld [vmem:[%s3113_s6 + $0x20] sm:$0xff] (!%p196_p0)  ;;  %v3121_v21 = vsub.f32 (!%p196_p0), %v2405_v10, %v1265_v14  ;;  %v2400_v22 = vld [vmem:[%s3113_s6 + $0x18] sm:$0xff] (!%p196_p0)  ;;  %s2413_s3 = sshll.u32 (!%p196_p0), %s2978_s13, 2  ;;  %s222_s5 = scalar_lea.vmem (!%p196_p0), [#allocation3], %s2398_s27 }
  0x2a   : > { %v3124_v23 = vpack.c.bf16 (!%p196_p0), %v1268_v15, %v1265_v14  ;;  %v237_v24 = vsel (!%p196_p0), %vm235_vm0, %v2399_v17, 0  ;;  %v1259_v25 = vsel (!%p196_p0), %vm235_vm0, %v2403_v20, 0  ;;  %v3128_v26 = vsub.f32 (!%p196_p0), %v2406_v13, %v1268_v15  ;;  %v2404_v27 = vld [vmem:[%s3113_s6 + $0x28] sm:$0xff] (!%p196_p0)  ;;  %v2410_v7 = vld [vmem:[%s3369_s1 + $0x38] sm:$0xff] (!%p196_p0)  ;;  %v225_v8 = vld [vmem:[%s3113_s6] sm:$0xff] (!%p196_p0)  ;;  %s2300_s4 = sadd.s32 (!%p196_p0), %s2413_s3, %s2412_s29  ;;  %s2288_s17 = scalar_lea.sflag (!%p196_p0), [#allocation4], %s3105_s30 }
  0x2b   : > { %2682 = vmatprep.subr.bf16.mxu1 (!%p196_p0), %v3111_v16  ;;  %v3132_v28 = vand.u32 (!%p196_p0), 4294901760, %v237_v24  ;;  %v332_v29 = vand.u32 (!%p196_p0), 4294901760, %v3116_v18  ;;  %v339_v30 = vand.u32 (!%p196_p0), 4294901760, %v3118_v19  ;;  %v3136_v31 = vand.u32 (!%p196_p0), 4294901760, %v1259_v25  ;;  %v2407_v9 = vld [vmem:[%s3113_s6 + $0x30] sm:$0xff] (!%p196_p0)  ;;  %v226_v20 = vld [vmem:[%s3113_s6 + $0x8] sm:$0xff] (!%p196_p0) }
  0x2c   : > { %2730 = vmatprep.subr.bf16.mxu0 (!%p196_p0), %v3124_v23  ;;  %2684 = vmatpush3.bf16.msra.mxu1 (!%p196_p0), %v3111_v16  ;;  %v1354_v32 = vand.u32 (!%p196_p0), 4294901760, %v3121_v21  ;;  %v1361_v33 = vand.u32 (!%p196_p0), 4294901760, %v3128_v26  ;;  %v240_v34 = vsel (!%p196_p0), %vm235_vm0, %v2400_v22, 0  ;;  %v1262_v35 = vsel (!%p196_p0), %vm235_vm0, %v2404_v27, 0  ;;  %s2414_s7 = sshll.u32 (!%p196_p0), %s2300_s4, 7  ;;  %s2992_s21 = smov (!%p196_p0), [#allocation3]  }
  0x2d   : > { %2732 = vmatpush3.bf16.msra.mxu0 (!%p196_p0), %v3124_v23  ;;  %v310_v36 = vsub.f32 (!%p196_p0), %v237_v24, %v3132_v28  ;;  %v333_v37 = vsub.f32 (!%p196_p0), %v3116_v18, %v332_v29  ;;  %v340_v38 = vsub.f32 (!%p196_p0), %v3118_v19, %v339_v30  ;;  %v3149_v39 = vsub.f32 (!%p196_p0), %v1259_v25, %v3136_v31  ;;  %s3314_s8 = scalar_lea.hbm (!%p196_p0), %s3370_s2, %s2414_s7  ;;  %s2900_s22 = sshll.u32 (!%p196_p0), %s2992_s21, 4  ;;  %s2901_s22 = int_to_ptr.vmem [resolvable:$false] %s2900_s22 }
  0x2e   : > { %v1355_v40 = vsub.f32 %v3121_v21, %v1354_v32  ;;  %v1362_v41 = vsub.f32 %v3128_v26, %v1361_v33  ;;  %v3153_v42 = vand.u32 4294901760, %v240_v34  ;;  %v3155_v43 = vand.u32 4294901760, %v1262_v35  ;;  %s2902_s25 = scalar_lea.vmem %s2901_s22, 512 }
  0x2f   : > { %v311_v44 = vand.u32 4294901760, %v310_v36  ;;  %v334_v45 = vand.u32 4294901760, %v333_v37  ;;  %v341_v46 = vand.u32 4294901760, %v340_v38  ;;  %v1333_v47 = vand.u32 4294901760, %v3149_v39 }
  0x30   : > { %v1356_v48 = vand.u32 4294901760, %v1355_v40  ;;  %v1363_v49 = vand.u32 4294901760, %v1362_v41  ;;  %v3159_v50 = vsub.f32 %v240_v34, %v3153_v42  ;;  %v3162_v51 = vsub.f32 %v1262_v35, %v3155_v43 }
  0x31   : > { %v312_v52 = vsub.f32 %v310_v36, %v311_v44  ;;  %v2685_v53 = vpack.c.bf16 %v341_v46, %v334_v45  ;;  %v1334_v54 = vsub.f32 %v3149_v39, %v1333_v47  ;;  %v2689_v0 = vpack.c.bf16 %v3118_v19, %v3116_v18 }
  0x32   : > { %v2733_v55 = vpack.c.bf16 %v1363_v49, %v1356_v48  ;;  %v321_v56 = vand.u32 4294901760, %v3159_v50  ;;  %v1343_v57 = vand.u32 4294901760, %v3162_v51  ;;  %v2737_v1 = vpack.c.bf16 %v3128_v26, %v3121_v21  ;;  %v2408_v21 = vld [vmem:[%s3113_s6 + $0x38] sm:$0xff]  ;;  %s2303_s6 = sshll.u32 %s222_s5, 4  ;;  %s3309_s6 = int_to_ptr.vmem [resolvable:$true] %s2303_s6 }
  0x33   : > { %v313_v58 = vand.u32 4294901760, %v312_v52  ;;  %2686 = vmatprep.subr.bf16.mxu1 %v2685_v53  ;;  %v1335_v59 = vand.u32 4294901760, %v1334_v54  ;;  %v2697_v2 = vpack.c.bf16 %v339_v30, %v332_v29  ;;  %v2745_v3 = vpack.c.bf16 %v1361_v33, %v1354_v32  ;;  %s2896_s18 = scalar_lea.vmem %s3309_s6, 256  ;;  %p2903_p4 = scmp.lt.s32.totalorder %s3309_s6, %s2901_s22 }
  0x34   : > { %2734 = vmatprep.subr.bf16.mxu0 %v2733_v55  ;;  %v322_v60 = vsub.f32 %v3159_v50, %v321_v56  ;;  %v1344_v61 = vsub.f32 %v3162_v51, %v1343_v57  ;;  %v751_v10 = vand.u32 4294901760, %v227_v4  ;;  %v754_v11 = vand.u32 4294901760, %v228_v5  ;;  %p2897_p1 = scmp.ne.s32.totalorder %s3309_s6, %s2896_s18  ;;  %p2904_p5 = scmp.lt.s32.totalorder %s2902_s25, %s2896_s18 }
  0x35   : > { %2517 = vmatprep.mubr.f32.mxu1 %v313_v58  ;;  %2601 = vmatprep.mubr.f32.mxu0 %v1335_v59  ;;  %v1781_v12 = vand.u32 4294901760, %v2409_v6  ;;  %v1784_v13 = vand.u32 4294901760, %v2410_v7  ;;  %v745_v14 = vsel %vm235_vm0, %v225_v8, 0  ;;  %v1775_v15 = vsel %vm235_vm0, %v2407_v9, 0 }
  0x36   : > { %v323_v62 = vand.u32 4294901760, %v322_v60  ;;  %v1345_v63 = vand.u32 4294901760, %v1344_v61  ;;  %v3200_v17 = vand.u32 4294901760, %v745_v14  ;;  %v3202_v18 = vsub.f32 %v227_v4, %v751_v10  ;;  %p2898_p2 = pnand %p2897_p1, %p3070_p8  ;;  %p2905_p6 = por %p2904_p5, %p2903_p4 }
  0x37   : > { %v3204_v19 = vsub.f32 %v228_v5, %v754_v11  ;;  %v3208_v22 = vand.u32 4294901760, %v1775_v15  ;;  %v3210_v24 = vsub.f32 %v2409_v6, %v1781_v12  ;;  %v3212_v25 = vsub.f32 %v2410_v7, %v1784_v13 }
  0x38   : > { %2518 = vmatmul.mubr.f32.vlgmr.msra.gmra.mrb[0].mxu1 %v323_v62  ;;  %2602 = vmatmul.mubr.f32.vlgmr.msra.gmra.mrb[0].mxu0 %v1345_v63  ;;  %v748_v26 = vsel %vm235_vm0, %v226_v20, 0  ;;  %v1778_v27 = vsel %vm235_vm0, %v2408_v21, 0  ;;  %v3219_v29 = vsub.f32 %v745_v14, %v3200_v17  ;;  %v840_v30 = vand.u32 4294901760, %v3202_v18  ;;  %p2899_p3 = pneg %p2898_p2 }
  0x39   : > { %2688 = vmatpush3.bf16.msra.mxu1 %v2685_v53  ;;  %2736 = vmatpush3.bf16.msra.mxu0 %v2733_v55  ;;  %v847_v32 = vand.u32 4294901760, %v3204_v19  ;;  %v3226_v33 = vsub.f32 %v1775_v15, %v3208_v22  ;;  %v1870_v34 = vand.u32 4294901760, %v3210_v24  ;;  %v1877_v35 = vand.u32 4294901760, %v3212_v25 }
  0x3a   : > { %2524 = vmatprep.mubr.f32.mxu1 %v3132_v28  ;;  %2690 = vmatprep.subr.bf16.mxu1 %v2689_v0  ;;  %v3232_v37 = vand.u32 4294901760, %v1778_v27  ;;  %v3234_v38 = vpack.c.bf16 %v754_v11, %v751_v10  ;;  %v841_v40 = vsub.f32 %v3202_v18, %v840_v30  ;;  %v2713_v62 = vpack.c.bf16 %v3204_v19, %v3202_v18  ;;  %p2906_p7 = pnand %p2905_p6, %p2899_p3 }
  0x3b   : > { %2608 = vmatprep.mubr.f32.mxu0 %v3136_v31  ;;  %2738 = vmatprep.subr.bf16.mxu0 %v2737_v1  ;;  %v848_v41 = vsub.f32 %v3204_v19, %v847_v32  ;;  %v1849_v45 = vand.u32 4294901760, %v3226_v33  ;;  %v1871_v46 = vsub.f32 %v3210_v24, %v1870_v34  ;;  %v2769_v63 = vpack.c.bf16 %v1877_v35, %v1870_v34 }
  0x3c   : > { %v1858_v49 = vsub.f32 %v1778_v27, %v3232_v37  ;;  %vm2284_vm1 = vcmask 523264  }
  0x3d   : > { %v849_v52 = vand.u32 4294901760, %v848_v41  ;;  %v1850_v53 = vsub.f32 %v3226_v33, %v1849_v45  ;;  %v1872_v54 = vand.u32 4294901760, %v1871_v46 }
  0x40   : > { %2525 = vmatmul.mubr.f32.vlgmr.msra.gmra.mrb[0].mxu1 %v3153_v42  ;;  %2609 = vmatmul.mubr.f32.vlgmr.msra.gmra.mrb[0].mxu0 %v3155_v43 }
  0x41   : > { %2692 = vmatpush3.bf16.msra.mxu1 %v2689_v0  ;;  %2740 = vmatpush3.bf16.msra.mxu0 %v2737_v1 }
  0x42   : > { %2531 = vmatprep.mubr.f32.mxu1 %v310_v36  ;;  %2694 = vmatprep.subr.bf16.mxu1 %v3111_v16  ;;  %v3230_v36 = vand.u32 4294901760, %v748_v26 }
  0x43   : > { %2615 = vmatprep.mubr.f32.mxu0 %v3149_v39  ;;  %2742 = vmatprep.subr.bf16.mxu0 %v3124_v23  ;;  %v819_v39 = vand.u32 4294901760, %v3219_v29 }
  0x44   : > { %v828_v48 = vsub.f32 %v748_v26, %v3230_v36 }
  0x46   : > { %v829_v55 = vand.u32 4294901760, %v828_v48 }
  0x48   : > { %2532 = vmatmul.mubr.f32.vlgmr.msra.gmra.mrb[0].mxu1 %v3159_v50  ;;  %2616 = vmatmul.mubr.f32.vlgmr.msra.gmra.mrb[0].mxu0 %v3162_v51  ;;  %v820_v50 = vsub.f32 %v3219_v29, %v819_v39  ;;  %v842_v51 = vand.u32 4294901760, %v841_v40  ;;  %v830_v59 = vsub.f32 %v828_v48, %v829_v55 }
  0x49   : > { %2696 = vmatpush3.bf16.msra.mxu1 %v3111_v16  ;;  %2744 = vmatpush3.bf16.msra.mxu0 %v3124_v23 }
  0x4a   : > { %2538 = vmatprep.mubr.f32.mxu1 %v311_v44  ;;  %2698 = vmatprep.subr.bf16.mxu1 %v2697_v2  ;;  %v3243_v44 = vpack.c.bf16 %v1784_v13, %v1781_v12 }
  0x4b   : > { %2622 = vmatprep.mubr.f32.mxu0 %v1333_v47  ;;  %2746 = vmatprep.subr.bf16.mxu0 %v2745_v3  ;;  %v1878_v47 = vsub.f32 %v3212_v25, %v1877_v35 }
  0x50   : > { %2539 = vmatmul.mubr.f32.vlgmr.msra.gmra.mrb[0].mxu1 %v321_v56  ;;  %2623 = vmatmul.mubr.f32.vlgmr.msra.gmra.mrb[0].mxu0 %v1343_v57  ;;  %v821_v56 = vand.u32 4294901760, %v820_v50  ;;  %v1851_v57 = vand.u32 4294901760, %v1850_v53 }
  0x51   : > { %2700 = vmatpush3.bf16.msra.mxu1 %v2697_v2  ;;  %2748 = vmatpush3.bf16.msra.mxu0 %v2745_v3 }
  0x52   : > { %2545 = vmatprep.mubr.f32.mxu1 %v3132_v28  ;;  %2702 = vmatprep.subr.bf16.mxu1 %v3111_v16 }
  0x53   : > { %2629 = vmatprep.mubr.f32.mxu0 %v3136_v31  ;;  %2750 = vmatprep.subr.bf16.mxu0 %v3124_v23 }
  0x58   : > { %2546 = vmatmul.mubr.f32.vlgmr.msra.gmra.mrb[0].mxu1 %v3153_v42  ;;  %2630 = vmatmul.mubr.f32.vlgmr.msra.gmra.mrb[0].mxu0 %v3155_v43 }
  0x59   : > { %2704 = vmatpush3.bf16.msra.mxu1 %v3111_v16  ;;  %2752 = vmatpush3.bf16.msra.mxu0 %v3124_v23  ;;  %v1879_v16 = vand.u32 4294901760, %v1878_v47  ;;  %v1859_v23 = vand.u32 4294901760, %v1858_v49 }
  0x5a   : > { %2552 = vmatprep.mubr.f32.mxu1 %v3132_v28  ;;  %2706 = vmatprep.subr.bf16.mxu1 %v3234_v38  ;;  %v2709_v28 = vpack.c.bf16 %v849_v52, %v842_v51 }
  0x5b   : > { %2636 = vmatprep.mubr.f32.mxu0 %v3136_v31  ;;  %2754 = vmatprep.subr.bf16.mxu0 %v3243_v44  ;;  %v2757_v58 = vpack.c.bf16 %v1879_v16, %v1872_v54  ;;  %v1860_v60 = vsub.f32 %v1858_v49, %v1859_v23  ;;  %v831_v31 = vand.u32 4294901760, %v830_v59 }
  0x5d   : > { %v1861_v61 = vand.u32 4294901760, %v1860_v60 }
  0x60   : > { %2553 = vmatmul.mubr.f32.vlgmr.msra.gmra.mrb[0].mxu1 %v3153_v42  ;;  %2637 = vmatmul.mubr.f32.vlgmr.msra.gmra.mrb[0].mxu0 %v3155_v43  ;;  %v2761_v42 = vpack.c.bf16 %v3212_v25, %v3210_v24  ;;  %v2721_v43 = vpack.c.bf16 %v847_v32, %v840_v30 }
  0x61   : > { %2708 = vmatpush3.bf16.msra.mxu1 %v3234_v38  ;;  %2756 = vmatpush3.bf16.msra.mxu0 %v3243_v44 }
  0x62   : > { %2559 = vmatprep.mubr.f32.mxu1 %v821_v56  ;;  %2710 = vmatprep.subr.bf16.mxu1 %v2709_v28 }
  0x63   : > { %2643 = vmatprep.mubr.f32.mxu0 %v1851_v57  ;;  %2758 = vmatprep.subr.bf16.mxu0 %v2757_v58 }
  0x68   : > { %2560 = vmatmul.mubr.f32.vlgmr.msra.gmra.mrb[0].mxu1 %v831_v31  ;;  %2644 = vmatmul.mubr.f32.vlgmr.msra.gmra.mrb[0].mxu0 %v1861_v61 }
  0x69   : > { %2712 = vmatpush3.bf16.msra.mxu1 %v2709_v28  ;;  %2760 = vmatpush3.bf16.msra.mxu0 %v2757_v58 }
  0x6a   : > { %2566 = vmatprep.mubr.f32.mxu1 %v3200_v17  ;;  %2714 = vmatprep.subr.bf16.mxu1 %v2713_v62 }
  0x6b   : > { %2650 = vmatprep.mubr.f32.mxu0 %v3208_v22  ;;  %2762 = vmatprep.subr.bf16.mxu0 %v2761_v42 }
  0x70   : > { %2567 = vmatmul.mubr.f32.vlgmr.msra.gmra.mrb[0].mxu1 %v3230_v36  ;;  %2651 = vmatmul.mubr.f32.vlgmr.msra.gmra.mrb[0].mxu0 %v3232_v37 }
  0x71   : > { %2716 = vmatpush3.bf16.msra.mxu1 %v2713_v62  ;;  %2764 = vmatpush3.bf16.msra.mxu0 %v2761_v42 }
  0x72   : > { %2573 = vmatprep.mubr.f32.mxu1 %v3219_v29  ;;  %2718 = vmatprep.subr.bf16.mxu1 %v3234_v38 }
  0x73   : > { %2657 = vmatprep.mubr.f32.mxu0 %v3226_v33  ;;  %2766 = vmatprep.subr.bf16.mxu0 %v3243_v44 }
  0x78   : > { %2574 = vmatmul.mubr.f32.vlgmr.msra.gmra.mrb[0].mxu1 %v828_v48  ;;  %2658 = vmatmul.mubr.f32.vlgmr.msra.gmra.mrb[0].mxu0 %v1858_v49 }
  0x79   : > { %2720 = vmatpush3.bf16.msra.mxu1 %v3234_v38  ;;  %2768 = vmatpush3.bf16.msra.mxu0 %v3243_v44 }
  0x7a   : > { %2580 = vmatprep.mubr.f32.mxu1 %v819_v39  ;;  %2722 = vmatprep.subr.bf16.mxu1 %v2721_v43 }
  0x7b   : > { %2664 = vmatprep.mubr.f32.mxu0 %v1849_v45  ;;  %2770 = vmatprep.subr.bf16.mxu0 %v2769_v63 }
  0x80   : > { %2581 = vmatmul.mubr.f32.vlgmr.msra.gmra.mrb[0].mxu1 %v829_v55  ;;  %2665 = vmatmul.mubr.f32.vlgmr.msra.gmra.mrb[0].mxu0 %v1859_v23 }
  0x81   : > { %2724 = vmatpush3.bf16.msra.mxu1 %v2721_v43  ;;  %2772 = vmatpush3.bf16.msra.mxu0 %v2769_v63 }
  0x82   : > { %2587 = vmatprep.mubr.f32.mxu1 %v3200_v17  ;;  %2726 = vmatprep.subr.bf16.mxu1 %v3234_v38 }
  0x83   : > { %2671 = vmatprep.mubr.f32.mxu0 %v3208_v22  ;;  %2774 = vmatprep.subr.bf16.mxu0 %v3243_v44 }
  0x88   : > { %2588 = vmatmul.mubr.f32.vlgmr.msra.gmra.mrb[0].mxu1 %v3230_v36  ;;  %2672 = vmatmul.mubr.f32.vlgmr.msra.gmra.mrb[0].mxu0 %v3232_v37 }
  0x89   : > { %2728 = vmatpush3.bf16.msra.mxu1 %v3234_v38  ;;  %2776 = vmatpush3.bf16.msra.mxu0 %v3243_v44 }
  0x8a   : > { %2594 = vmatprep.mubr.f32.mxu1 %v3200_v17  ;;  %2678 = vmatprep.mubr.f32.mxu0 %v3208_v22 }
  0x90   : > { %2595 = vmatmul.mubr.f32.vlgmr.msra.gmra.mrb[0].mxu1 %v3230_v36  ;;  %2679 = vmatmul.mubr.f32.vlgmr.msra.gmra.mrb[0].mxu0 %v3232_v37 }
 0x163   : > { %v2596_v0 = vpop.f32.mrb[0].mxu1  ;;  %v2680_v1 = vpop.f32.mrb[0].mxu0 }
 0x164   : > { %v2777_v2 = vadd.f32 %v2680_v1, %v2596_v0  ;;  %v1242_v3 = vpop.f32.mrb[1].mxu1  ;;  %v2272_v4 = vpop.f32.mrb[1].mxu0 }
 0x165   : > { %v2778_v5 = vadd.f32 %v2272_v4, %v1242_v3 }
 0x166   : > { %2286 = vst.msk [vmem:[%s222_s5 + $0x8] sm:$0xff] %vm2284_vm1, %v2777_v2 }
 0x167   : > { %2285 = vst.msk [vmem:[%s222_s5] sm:$0xff] %vm2284_vm1, %v2778_v5 }
 0x168   : > { %2909 = shalt.err (!%p2906_p7)
}
 0x169   : > { %s2910_s26 = scalar_lea.hbm %s3314_s8, 256  ;;  %s2914_s3 = scalar_lea.hbm %s3370_s2, 1024 }
 0x16a   : > { %p2911_p10 = scmp.ne.s32.totalorder %s3314_s8, %s2910_s26  ;;  %p2915_p13 = scmp.lt.u32.totalorder %s3314_s8, %s3370_s2 }
 0x16b   : > { %p2916_p0 = scmp.lt.u32.totalorder %s2914_s3, %s2910_s26  ;;  %p2918_p2 = scmp.lt.u32.totalorder %s2910_s26, %s3314_s8 }
 0x16c   : > { %p2912_p11 = pnand %p2911_p10, %p3070_p8 }
 0x16d   : > { %p2917_p1 = por %p2916_p0, %p2915_p13 }
 0x16e   : > { %p2913_p12 = pneg %p2912_p11 }
 0x16f   : > { %p2919_p3 = por %p2918_p2, %p2917_p1 }
 0x171   : > { %p2920_p4 = pnand %p2919_p3, %p2913_p12 }
 0x173   : > { %2923 = shalt.err (!%p2920_p4)
}
 0x174   : > { %s2993_s7 = smov 128   ;;  %s2994_s12 = smov 8  }
 0x175   : > { %2823 = dma.vmem_to_hbm [thread:$0]  (%p3070_p8), %s3309_s6, 256, %s3314_s8, %s2288_s17, %s2993_s7, %s2993_s7, %s2994_s12  }
 0x176 PF: > { %p2829_p5 = scmp.ge.s32.totalorder %s2990_s16, 2  ;;  %s2318_s13 = sand.u32 1, %s2962_s9  }
 0x177   : > { %s2319_s18 = scalar_lea.sflag [#allocation4], %s2318_s13 }
 0x178   : > { %p2826_p6 = pnand %p2829_p5, %p3074_p9 }
 0x17a   : > { %2957 = dma.done.wait (!%p2826_p6), %s2319_s18, 256  }
 0x17b   : > { %2959 = vsyncadd (!%p2826_p6), %s2319_s18, 4294967040  ;;  %s15_s16 = sadd.s32 1, %s2990_s16   ;;  %s3374_s9 = smov %s2966_s10 }
 0x17c   : > { %p12_p7 = scmp.ge.s32.totalorder %s15_s16, 6   ;;  %s3375_s10 = smov %s2970_s11 }
 0x17d   : > { %s3376_s11 = smov %s3082_s28  ;;  %s3377_s12 = smov %s2982_s14 }
 0x17e   : > { %s3378_s13 = smov %s2986_s15  ;;  %s3379_s14 = smov %s3382_s19 }
 0x17f   : > { %s3380_s15 = smov %s3386_s20  ;;  %14 = sbr.rel (!%p12_p7) target bundleno = 5 (0x5), region = 112 }
 0x186   :  { %2324 = vsyncpa [#allocation4], 1 }
 0x187   :  { %2326 = vsyncpa [#allocation4 + $0x1], 1 }

</bundles_post_ra>
